<compile_context>
chip_gen: v7x
topology: tpu7x:2x2x1
jax: 0.10.0
libtpu: 0.0.40
codegen_flags: <defaults>
</compile_context>

<pallas_src>
import functools

import jax
import jax.numpy as jnp
from jax.experimental import pallas as pl
from jax.experimental.pallas import tpu as pltpu


def _cdiv(a, b):
    return (a + b - 1) // b


def _round_up(a, b):
    return _cdiv(a, b) * b


def g_aggr_kernel(e_ref, p_ref, w_ref, b_ref, o_ref, acc_ref, *, inv_n):
    # e_ref: [Te, L], p_ref: [Tp, L], w_ref: [2, L] (lane-tiled torch weight),
    # b_ref: [2, 1], o_ref: [2, 1], acc_ref: [1, L] f32 scratch.
    step = pl.program_id(0)

    @pl.when(step == 0)
    def _():
        acc_ref[...] = jnp.zeros_like(acc_ref)

    # Partial packed column-sums of this row tile from both inputs (f32 acc).
    acc_ref[...] += (
        jnp.sum(e_ref[...].astype(jnp.float32), axis=0, keepdims=True)
        + jnp.sum(p_ref[...].astype(jnp.float32), axis=0, keepdims=True)
    )

    @pl.when(step == pl.num_programs(0) - 1)
    def _():
        # Finalize: 1/N scale, tiny VPU "matmul" (broadcast-mul + lane-reduce
        # implicitly folds the 4-rows-per-128-lanes packing), then bias once.
        mean_packed = acc_ref[...] * inv_n                     # [1, L]
        prod = w_ref[...].astype(jnp.float32) * mean_packed    # [2, L]
        out = jnp.sum(prod, axis=1, keepdims=True)             # [2, 1]
        o_ref[...] = out + b_ref[...].astype(jnp.float32)


def _pack_rows(x, pack, packed_rows_target):
    """Zero-pad rows and reshape [n, d] -> [packed_rows_target, pack*d]."""
    n, d = x.shape
    pad = packed_rows_target * pack - n
    if pad:
        x = jnp.pad(x, ((0, pad), (0, 0)))
    return x.reshape(packed_rows_target, pack * d)


def g_aggr_forward(elements, process, weight, bias, *, max_tile_packed_rows=1024):
    """elements: [Ne, D], process: [Np, D], weight: [2, D] (torch layout), bias: [2]."""
    n_e, d = elements.shape
    n_p, d_p = process.shape
    assert d == d_p and weight.shape == (2, d) and bias.shape == (2,)
    n_total = n_e + n_p

    # Lane packing: put `pack` logical rows into one 128-lane row when D | 128.
    pack = 128 // d if (d <= 128 and 128 % d == 0) else 1
    lanes = pack * d

    e_rows = _cdiv(n_e, pack)
    p_rows = _cdiv(n_p, pack)

    # Shared 1-D grid over row tiles; both inputs are padded (with zeros, which
    # contribute nothing to the sum) to grid_n equal-size tiles each.
    grid_n = max(1, _cdiv(max(e_rows, p_rows), max_tile_packed_rows))

    def _tile(rows):
        t = max(1, _cdiv(rows, grid_n))
        if grid_n > 1:
            t = _round_up(t, 8)  # sublane-aligned tiles when block < full array
        return t

    te, tp = _tile(e_rows), _tile(p_rows)

    e_pk = _pack_rows(elements, pack, grid_n * te)   # [grid_n*te, lanes]
    p_pk = _pack_rows(process, pack, grid_n * tp)    # [grid_n*tp, lanes]
    w_lanes = jnp.tile(weight, (1, pack))            # [2, lanes]
    b_col = bias.reshape(2, 1)                       # [2, 1]

    kernel = functools.partial(g_aggr_kernel, inv_n=float(1.0 / n_total))

    out = pl.pallas_call(
        kernel,
        out_shape=jax.ShapeDtypeStruct((2, 1), jnp.float32),
        grid_spec=pltpu.PrefetchScalarGridSpec(
            num_scalar_prefetch=0,
            grid=(grid_n,),
            in_specs=[
                pl.BlockSpec((te, lanes), lambda i: (i, 0)),
                pl.BlockSpec((tp, lanes), lambda i: (i, 0)),
                pl.BlockSpec((2, lanes), lambda i: (0, 0)),
                pl.BlockSpec((2, 1), lambda i: (0, 0)),
            ],
            out_specs=pl.BlockSpec((2, 1), lambda i: (0, 0)),
            scratch_shapes=[pltpu.VMEM((1, lanes), jnp.float32)],
        ),
        compiler_params=pltpu.CompilerParams(
            dimension_semantics=("arbitrary",),
        ),
    )(e_pk, p_pk, w_lanes, b_col)

    return out[:, 0]  # shape (2,), matching torch's x.mean(dim=0)


if __name__ == "__main__":
    # Small shapes consistent with the module: layer3 = 32 hidden features,
    # 8 'elements' nodes and 8 'process' nodes.
    layer3 = 32
    n_elements, n_process = 8, 8

    key = jax.random.PRNGKey(0)
    k_el, k_pr, k_w, k_b, k_el2, k_pr2 = jax.random.split(key, 6)

    elements = jax.random.normal(k_el, (n_elements, layer3), dtype=jnp.float32)
    process = jax.random.normal(k_pr, (n_process, layer3), dtype=jnp.float32)

    # Deterministic Linear(layer3, 2) init mimicking torch.nn.Linear:
    # U(-1/sqrt(in_features), 1/sqrt(in_features)) for weight and bias.
    bound = 1.0 / (layer3 ** 0.5)
    weight = jax.random.uniform(k_w, (2, layer3), dtype=jnp.float32,
                                minval=-bound, maxval=bound)
    bias = jax.random.uniform(k_b, (2,), dtype=jnp.float32,
                              minval=-bound, maxval=bound)

    out = g_aggr_forward(elements, process, weight, bias)
    jax.block_until_ready(out)

    ref = jnp.mean(jnp.concatenate([elements, process], axis=0) @ weight.T + bias,
                   axis=0)
    assert out.shape == (2,)
    assert jnp.allclose(out, ref, atol=1e-5, rtol=1e-5), (out, ref)

    # Second check exercising the gridded / accumulator path (grid_n > 1,
    # unequal row counts, padding) at still-small shapes.
    elements2 = jax.random.normal(k_el2, (600, layer3), dtype=jnp.float32)
    process2 = jax.random.normal(k_pr2, (520, layer3), dtype=jnp.float32)
    out2 = g_aggr_forward(elements2, process2, weight, bias,
                          max_tile_packed_rows=64)
    jax.block_until_ready(out2)
    ref2 = jnp.mean(jnp.concatenate([elements2, process2], axis=0) @ weight.T + bias,
                    axis=0)
    assert jnp.allclose(out2, ref2, atol=1e-4, rtol=1e-4), (out2, ref2)

    print("KERNEL_OK")
</pallas_src>

<mosaic_0001>
module attributes {stable_mosaic.version = 11 : i64} {
  func.func @g_aggr_kernel(%arg0: i32, %arg1: memref<2x128xf32, #tpu.memory_space<vmem>>, %arg2: memref<2x128xf32, #tpu.memory_space<vmem>>, %arg3: memref<2x128xf32, #tpu.memory_space<vmem>>, %arg4: memref<2x1xf32, #tpu.memory_space<vmem>>, %arg5: memref<2x1xf32, #tpu.memory_space<vmem>>, %arg6: memref<1x128xf32, #tpu.memory_space<vmem>>) attributes {dimension_semantics = [#tpu.dimension_semantics<arbitrary>], iteration_bounds = array<i64: 1>, scalar_prefetch = 0 : i64, scratch_operands = 1 : i64, tpu.core_type = #tpu.core_type<tc>, window_params = [{transform_indices = @transform_0, window_bounds = array<i64: 2, 128>}, {transform_indices = @transform_1, window_bounds = array<i64: 2, 128>}, {pipeline_mode = #tpu.pipeline_mode<synchronous>, transform_indices = @transform_2, window_bounds = array<i64: 2, 128>}, {pipeline_mode = #tpu.pipeline_mode<synchronous>, transform_indices = @transform_3, window_bounds = array<i64: 2, 1>}, {pipeline_mode = #tpu.pipeline_mode<synchronous>, transform_indices = @transform_4, window_bounds = array<i64: 2, 1>}]} {
    %c0_i32 = arith.constant 0 : i32
    %0 = arith.cmpi eq, %arg0, %c0_i32 : i32
    %1 = arith.extui %0 : i1 to i32
    %c0_i32_0 = arith.constant 0 : i32
    %2 = arith.cmpi ne, %1, %c0_i32_0 : i32
    scf.if %2 {
      %cst_11 = arith.constant 0.000000e+00 : f32
      %16 = vector.broadcast %cst_11 : f32 to vector<1x128xf32>
      %c0_12 = arith.constant 0 : index
      %c0_13 = arith.constant 0 : index
      %17 = vector.load %arg6[%c0_12, %c0_13] : memref<1x128xf32, #tpu.memory_space<vmem>>, vector<1x128xf32>
      tpu.vector_store %arg6[%c0_12, %c0_13], %16 {strides = array<i32>} : memref<1x128xf32, #tpu.memory_space<vmem>>, vector<1x128xf32>,
    } else {
    }
    %c0 = arith.constant 0 : index
    %c0_1 = arith.constant 0 : index
    %3 = vector.load %arg6[%c0, %c0_1] : memref<1x128xf32, #tpu.memory_space<vmem>>, vector<1x128xf32>
    %c0_2 = arith.constant 0 : index
    %c0_3 = arith.constant 0 : index
    %4 = vector.load %arg1[%c0_2, %c0_3] : memref<2x128xf32, #tpu.memory_space<vmem>>, vector<2x128xf32>
    %cst = arith.constant dense<0.000000e+00> : vector<128xf32>
    %5 = vector.multi_reduction <add>, %4, %cst [0] : vector<2x128xf32> to vector<128xf32>
    %6 = vector.shape_cast %5 : vector<128xf32> to vector<1x128xf32>
    %c0_4 = arith.constant 0 : index
    %c0_5 = arith.constant 0 : index
    %7 = vector.load %arg2[%c0_4, %c0_5] : memref<2x128xf32, #tpu.memory_space<vmem>>, vector<2x128xf32>
    %cst_6 = arith.constant dense<0.000000e+00> : vector<128xf32>
    %8 = vector.multi_reduction <add>, %7, %cst_6 [0] : vector<2x128xf32> to vector<128xf32>
    %9 = vector.shape_cast %8 : vector<128xf32> to vector<1x128xf32>
    %10 = arith.addf %6, %9 : vector<1x128xf32>
    %11 = arith.addf %3, %10 : vector<1x128xf32>
    %c0_7 = arith.constant 0 : index
    %c0_8 = arith.constant 0 : index
    %12 = vector.load %arg6[%c0_7, %c0_8] : memref<1x128xf32, #tpu.memory_space<vmem>>, vector<1x128xf32>
    tpu.vector_store %arg6[%c0_7, %c0_8], %11 {strides = array<i32>} : memref<1x128xf32, #tpu.memory_space<vmem>>, vector<1x128xf32>,
    %c0_i32_9 = arith.constant 0 : i32
    %13 = arith.cmpi eq, %arg0, %c0_i32_9 : i32
    %14 = arith.extui %13 : i1 to i32
    %c0_i32_10 = arith.constant 0 : i32
    %15 = arith.cmpi ne, %14, %c0_i32_10 : i32
    scf.if %15 {
      %c0_11 = arith.constant 0 : index
      %c0_12 = arith.constant 0 : index
      %16 = vector.load %arg6[%c0_11, %c0_12] : memref<1x128xf32, #tpu.memory_space<vmem>>, vector<1x128xf32>
      %cst_13 = arith.constant 6.250000e-02 : f32
      %17 = vector.broadcast %cst_13 : f32 to vector<1x128xf32>
      %18 = arith.mulf %16, %17 : vector<1x128xf32>
      %c0_14 = arith.constant 0 : index
      %c0_15 = arith.constant 0 : index
      %19 = vector.load %arg3[%c0_14, %c0_15] : memref<2x128xf32, #tpu.memory_space<vmem>>, vector<2x128xf32>
      %20 = vector.broadcast %18 : vector<1x128xf32> to vector<2x128xf32>
      %21 = arith.mulf %19, %20 : vector<2x128xf32>
      %cst_16 = arith.constant dense<0.000000e+00> : vector<2xf32>
      %22 = vector.multi_reduction <add>, %21, %cst_16 [1] : vector<2x128xf32> to vector<2xf32>
      %23 = vector.shape_cast %22 : vector<2xf32> to vector<2x1xf32>
      %c0_17 = arith.constant 0 : index
      %c0_18 = arith.constant 0 : index
      %24 = vector.load %arg4[%c0_17, %c0_18] : memref<2x1xf32, #tpu.memory_space<vmem>>, vector<2x1xf32>
      %25 = arith.addf %23, %24 : vector<2x1xf32>
      %c0_19 = arith.constant 0 : index
      %c0_20 = arith.constant 0 : index
      %26 = vector.load %arg5[%c0_19, %c0_20] : memref<2x1xf32, #tpu.memory_space<vmem>>, vector<2x1xf32>
      tpu.vector_store %arg5[%c0_19, %c0_20], %25 {strides = array<i32>} : memref<2x1xf32, #tpu.memory_space<vmem>>, vector<2x1xf32>,
    } else {
    }
    return
  }
  func.func @transform_0(%arg0: i32) -> (i32, i32) {
    %c0_i32 = arith.constant 0 : i32
    %c0_i32_0 = arith.constant 0 : i32
    return %arg0, %c0_i32 : i32, i32
  }
  func.func @transform_1(%arg0: i32) -> (i32, i32) {
    %c0_i32 = arith.constant 0 : i32
    %c0_i32_0 = arith.constant 0 : i32
    return %arg0, %c0_i32 : i32, i32
  }
  func.func @transform_2(%arg0: i32) -> (i32, i32) {
    %c0_i32 = arith.constant 0 : i32
    %c0_i32_0 = arith.constant 0 : i32
    %c0_i32_1 = arith.constant 0 : i32
    return %c0_i32, %c0_i32_0 : i32, i32
  }
  func.func @transform_3(%arg0: i32) -> (i32, i32) {
    %c0_i32 = arith.constant 0 : i32
    %c0_i32_0 = arith.constant 0 : i32
    %c0_i32_1 = arith.constant 0 : i32
    return %c0_i32, %c0_i32_0 : i32, i32
  }
  func.func @transform_4(%arg0: i32) -> (i32, i32) {
    %c0_i32 = arith.constant 0 : i32
    %c0_i32_0 = arith.constant 0 : i32
    %c0_i32_1 = arith.constant 0 : i32
    return %c0_i32, %c0_i32_0 : i32, i32
  }
}

</mosaic_0001>

<bundles_post_ra>
// kernel: tpu_custom_call.1
= control target key start
LH: loop header
LB: loop body
LE: loop exit
PB: predicated region body
PF: predicated region fallthrough
CT: control target
= control target key end

     0   :  { %vm24_vm0 = vcmask 1041408   ;;  %v68_v0 = vmov 0.0   ;;  %v50_v20 = vlaneseq  ;;  %vm61_vm1 = vcmask 1024   ;;  %s112_s0 = inlined_call_operand.vmem [shape: f32[2,128], index: 0, kind: input, shape index: {}]   ;;  %s113_s1 = inlined_call_operand.vmem [shape: f32[2,128], index: 1, kind: input, shape index: {}]   ;;  %s114_s2 = inlined_call_operand.vmem [shape: f32[2,128], index: 2, kind: input, shape index: {}]   ;;  %s115_s3 = inlined_call_operand.vmem [shape: f32[2,1], index: 3, kind: input, shape index: {}]   ;;  %s116_s4 = inlined_call_operand.vmem [shape: f32[2,1], index: 4, kind: output, shape index: {}]  }
   0x1   :  { %21 = vst [vmem:[#allocation2] sm:$0x1] %v68_v0  ;;  %v23_v1 = vld [vmem:[%s112_s0] sm:$0x3] }
   0x2   :  { %v32_v2 = vld [vmem:[%s113_s1] sm:$0x3]  ;;  %v25_v3 = vsel %vm24_vm0, %v23_v1, 0.0  ;;  %v51_v21 = vshrl.u32 %v50_v20, 7 }
   0x3   :  { %v33_v4 = vsel %vm24_vm0, %v32_v2, 0.0  ;;  %v26_v5 = vrot.slane %v25_v3, 4  ;;  %v48_v25 = vld [vmem:[%s114_s2] sm:$0x3] }
   0x4   :  { %v34_v6 = vrot.slane %v33_v4, 4  ;;  %v52_v22 = vsub.s32 0, %v51_v21  ;;  %v59_v29 = vld [vmem:[%s115_s3] sm:$0x3] }
   0x5   :  { %v27_v7 = vadd.f32 %v26_v5, %v25_v3 }
   0x6   :  { %v35_v8 = vadd.f32 %v34_v6, %v33_v4 }
   0x7   :  { %v28_v9 = vrot.slane %v27_v7, 2 }
   0x8   :  { %v36_v10 = vrot.slane %v35_v8, 2  ;;  %v22_v17 = vld [vmem:[#allocation2] sm:$0x1] }
   0x9   :  { %v29_v11 = vadd.f32 %v28_v9, %v27_v7 }
   0xa   :  { %v37_v12 = vadd.f32 %v36_v10, %v35_v8 }
   0xb   :  { %v30_v13 = vrot.slane %v29_v11, 1 }
   0xc   :  { %v38_v14 = vrot.slane %v37_v12, 1 }
   0xd   :  { %v31_v15 = vadd.f32 %v30_v13, %v29_v11 }
   0xe   :  { %v39_v16 = vadd.f32 %v38_v14, %v37_v12 }
  0x10   :  { %v40_v18 = vadd.f32 %v39_v16, %v31_v15 }
  0x12   :  { %v41_v19 = vadd.f32 %v40_v18, %v22_v17 }
  0x14   :  { %42 = vst [vmem:[#allocation2] sm:$0x1] %v41_v19 }
  0x1b   :  { %v46_v23 = vld [vmem:[#allocation2] sm:$0x1] }
  0x1c   :  { %v47_v24 = vmul.f32 0.0625, %v46_v23 }
  0x1e   :  { %v53_v26 = vrot.slane %v47_v24, %v52_v22 }
  0x20   :  { %v55_v27 = vmul.f32 %v53_v26, %v48_v25 }
  0x22   :  { %v56_v28 = vsel %vm24_vm0, %v55_v27, 0.0 }
  0x23   :  { %57 = vadd.xlane.f32.xlu0 %v56_v28 }
  0xb0   :  { %v58_v30 = vpop.xlane.xlu0 %57 }
  0xb1   :  { %v60_v31 = vadd.f32 %v59_v29, %v58_v30 }
  0xb3   :  { %62 = vst.msk [vmem:[%s116_s4] sm:$0x3] %vm61_vm1, %v60_v31 }

</bundles_post_ra>
